<compile_context>
chip_gen: v7x
topology: tpu7x:2x2x1
jax: 0.10.0
libtpu: 0.0.40
codegen_flags: <defaults>
</compile_context>

<pallas_src>
import jax
import jax.numpy as jnp
from jax import lax
from jax.experimental import pallas as pl
from jax.experimental.pallas import tpu as pltpu

_LANE = 128
_SMOOTH = 1e-05
# Masked-lane logit: sigmoid(-100) ~ 3.7e-44 and bce(-100, 0) ~ 3.7e-44, so
# padded lanes contribute ~0 to every partial sum (finite for f32/bf16).
_NEG_BIG = -100.0


def _make_kernel(num_tiles, steps, tile, sub, s, needs_mask, padded_grid):
    """Builds the kernel closure over the static tiling parameters."""
    n_inner = tile // sub

    def kernel(x_ref, t_ref, acc_ref):
        # x_ref, t_ref : (N, C, tile) input blocks (lane-dense spatial axis).
        # acc_ref      : (4, N, C, sub) resident lane-wise accumulator:
        #                0: sum sigmoid*t   1: sum sigmoid
        #                2: sum t           3: sum bce_elementwise
        i = pl.program_id(0)
        j = pl.program_id(1)
        blk = i * steps + j

        @pl.when(j == 0)
        def _init():
            acc_ref[...] = jnp.zeros(acc_ref.shape, acc_ref.dtype)

        def accumulate():
            base = blk * tile
            if needs_mask:
                lane_iota = lax.broadcasted_iota(jnp.int32, (1, 1, sub), 2)

            def body(k, carry):
                start = pl.multiple_of(k * sub, sub)
                x = x_ref[:, :, pl.ds(start, sub)].astype(jnp.float32)
                t = t_ref[:, :, pl.ds(start, sub)].astype(jnp.float32)
                if needs_mask:
                    valid = (base + start + lane_iota) < s
                    x = jnp.where(valid, x, _NEG_BIG)
                    t = jnp.where(valid, t, 0.0)

                # Numerically stable BCE-with-logits; exp(-|x|) reused below.
                e = jnp.exp(-jnp.abs(x))
                d = 1.0 + e
                bce = jnp.maximum(x, 0.0) - x * t + jnp.log(d)

                # sigmoid from e: EUP reciprocal + one Newton step (keeps
                # relative error ~1e-7 instead of a full VALU divide).
                r = pl.reciprocal(d, approx=True)
                r = r * (2.0 - d * r)
                sig = jnp.where(x >= 0.0, r, e * r)

                # Lane-wise partial sums only: plain full-vreg VPU adds.
                # (All channels share the same vregs; slicing 1:3 here would
                # just force a relayout, so accumulate everything.)
                acc_ref[0] += sig * t
                acc_ref[1] += sig
                acc_ref[2] += t
                acc_ref[3] += bce
                return carry

            lax.fori_loop(0, n_inner, body, 0)

        if padded_grid:
            # Robust 2-core split with odd tile counts: the padded trailing
            # block re-reads a valid tile (clamped index_map) but is skipped.
            @pl.when(blk < num_tiles)
            def _():
                accumulate()
        else:
            accumulate()

    return kernel


def bce_dice_loss_lits2017(logits, target, *, max_tile_f32_bytes=None,
                           sub_chunk_lanes=4096):
    """Scalar BCE + mean-dice(ch1, ch2) loss, matching BCEDiceLoss_lits2017."""
    assert logits.shape == target.shape
    n, c, h, w = logits.shape
    assert c >= 3, "dice terms use channels 1 and 2"

    s = h * w
    total_elems = n * c * s
    x = logits.reshape(n, c, s)
    t = target.reshape(n, c, s)

    # ---- device heuristics --------------------------------------------------
    try:
        kind = jax.devices()[0].device_kind.lower()
    except Exception:  # pragma: no cover - defensive
        kind = ""
    is_v7 = ("v7" in kind) or ("7x" in kind)
    multi_tc = is_v7 or ("v4" in kind) or ("v5p" in kind)

    if max_tile_f32_bytes is None:
        # ~4 MiB / input / step on v7x (64 MiB VMEM), ~8 MiB on v5e/v6e.
        max_tile_f32_bytes = (4 << 20) if is_v7 else (8 << 20)

    # ---- tile selection: multiple of the inner sub-chunk, no divisor search,
    # no jnp.pad — the ragged tail (if any) is masked in-kernel.
    s_chunks = pl.cdiv(s, _LANE)
    sub_chunks = max(min(sub_chunk_lanes // _LANE, s_chunks), 1)
    sub = sub_chunks * _LANE
    target_chunks = max(int(max_tile_f32_bytes) // (4 * n * c * _LANE), 1)
    tile_subs = max(min(target_chunks // sub_chunks,
                        pl.cdiv(s_chunks, sub_chunks)), 1)
    tile = tile_subs * sub
    num_tiles = pl.cdiv(s, tile)
    needs_mask = (s % tile) != 0

    # ---- optional 2-TensorCore split (megacore chips only) ------------------
    n_split = 2 if (multi_tc and num_tiles >= 2) else 1
    steps = pl.cdiv(num_tiles, n_split)
    padded_grid = (n_split * steps) != num_tiles

    kernel = _make_kernel(num_tiles, steps, tile, sub, s, needs_mask, padded_grid)

    def in_map(i, j):
        # Clamp so a padded trailing block never DMAs out of bounds; the
        # kernel skips its contribution via pl.when.
        return (0, 0, jnp.minimum(i * steps + j, num_tiles - 1))

    in_spec = pl.BlockSpec((n, c, tile), in_map)
    out_spec = pl.BlockSpec((None, 4, n, c, sub), lambda i, j: (i, 0, 0, 0, 0))

    in_bytes = n * c * tile * x.dtype.itemsize
    acc_bytes = 4 * n * c * sub * 4
    # 2 inputs x 2 pipeline buffers + bounded f32 sub-chunk temporaries + acc.
    vmem_need = 4 * in_bytes + 10 * (n * c * sub * 4) + 2 * acc_bytes
    vmem_limit = int(min(max(vmem_need, 32 << 20), 48 << 20))  # v7x-safe cap

    cost = pl.CostEstimate(
        flops=14 * total_elems,
        transcendentals=3 * total_elems,
        bytes_accessed=2 * total_elems * x.dtype.itemsize + n_split * acc_bytes,
    )

    if n_split > 1:
        dimsem = (getattr(pltpu, "CORE_PARALLEL", pltpu.PARALLEL), pltpu.ARBITRARY)
    else:
        dimsem = ("arbitrary", "arbitrary")

    partials = pl.pallas_call(
        kernel,
        out_shape=jax.ShapeDtypeStruct((n_split, 4, n, c, sub), jnp.float32),
        grid=(n_split, steps),
        in_specs=[in_spec, in_spec],
        out_specs=out_spec,
        compiler_params=pltpu.CompilerParams(
            dimension_semantics=dimsem,
            vmem_limit_bytes=vmem_limit,
        ),
        cost_estimate=cost,
    )(x, t)

    # ---- finalize (tiny, once): cross-lane + cross-core reduce, smooth/divide.
    acc = jnp.sum(partials, axis=(0, -1))          # (4, N, C)
    inter = acc[0, :, 1:3]                         # (N, 2)
    sum_p = acc[1, :, 1:3]
    sum_g = acc[2, :, 1:3]
    bce = jnp.sum(acc[3]) / total_elems
    dice = (2.0 * inter + _SMOOTH) / (sum_p + sum_g + _SMOOTH)   # (N, 2)
    dice_1 = 1.0 - jnp.sum(dice[:, 0]) / n
    dice_2 = 1.0 - jnp.sum(dice[:, 1]) / n
    return bce + (dice_1 + dice_2) / 2.0


def _reference(logits, target):
    """Pure-JAX reference mirroring the PyTorch module."""
    x = logits.astype(jnp.float32)
    t = target.astype(jnp.float32)
    bce = jnp.mean(jnp.maximum(x, 0.0) - x * t + jnp.log1p(jnp.exp(-jnp.abs(x))))
    sig = jax.nn.sigmoid(x)
    num = x.shape[0]

    def dice(ch):
        p = sig[:, ch].reshape(num, -1)
        g = t[:, ch].reshape(num, -1)
        d = (2.0 * jnp.sum(p * g, axis=1) + _SMOOTH) / (
            jnp.sum(p, axis=1) + jnp.sum(g, axis=1) + _SMOOTH)
        return 1.0 - jnp.sum(d) / num

    return bce + (dice(1) + dice(2)) / 2.0


if __name__ == "__main__":
    key = jax.random.PRNGKey(0)
    k1, k2, k3, k4 = jax.random.split(key, 4)

    # Module-implied shape (N, C, H, W) = (2, 4, 16, 16): single tile, no mask.
    logits = jax.random.normal(k1, (2, 4, 16, 16), dtype=jnp.float32)
    target = jax.random.uniform(k2, (2, 4, 16, 16), dtype=jnp.float32)
    loss = jax.block_until_ready(bce_dice_loss_lits2017(logits, target))
    ref = jax.block_until_ready(_reference(logits, target))
    assert jnp.allclose(loss, ref, rtol=1e-4, atol=1e-5), (loss, ref)

    # H*W = 576 (not a multiple of 128) with a tiny tile: exercises 3-step
    # accumulation, the inner sub-chunk loop, and in-kernel tail masking
    # (no jnp.pad anywhere).
    logits2 = jax.random.normal(k3, (2, 4, 24, 24), dtype=jnp.float32)
    target2 = jax.random.uniform(k4, (2, 4, 24, 24), dtype=jnp.float32)
    loss2 = jax.block_until_ready(
        bce_dice_loss_lits2017(logits2, target2,
                               max_tile_f32_bytes=4 * 2 * 4 * 256,
                               sub_chunk_lanes=128))
    ref2 = jax.block_until_ready(_reference(logits2, target2))
    assert jnp.allclose(loss2, ref2, rtol=1e-4, atol=1e-5), (loss2, ref2)

    print("KERNEL_OK")
</pallas_src>

<mosaic_0001>
module attributes {stable_mosaic.version = 11 : i64} {
  func.func @kernel(%arg0: i32, %arg1: i32, %arg2: memref<2x4x256xf32, #tpu.memory_space<vmem>>, %arg3: memref<2x4x256xf32, #tpu.memory_space<vmem>>, %arg4: memref<1x4x2x4x256xf32, #tpu.memory_space<vmem>>) attributes {dimension_semantics = [#tpu.dimension_semantics<arbitrary>, #tpu.dimension_semantics<arbitrary>], iteration_bounds = array<i64: 1, 1>, scalar_prefetch = 0 : i64, scratch_operands = 0 : i64, tpu.core_type = #tpu.core_type<tc>, window_params = [{transform_indices = @transform_0, window_bounds = array<i64: 2, 4, 256>}, {transform_indices = @transform_1, window_bounds = array<i64: 2, 4, 256>}, {transform_indices = @transform_2, window_bounds = array<i64: 1, 4, 2, 4, 256>}]} {
    %c0_i32 = arith.constant 0 : i32
    %0 = arith.cmpi eq, %arg1, %c0_i32 : i32
    %1 = arith.extui %0 : i1 to i32
    %c0_i32_0 = arith.constant 0 : i32
    %2 = arith.cmpi ne, %1, %c0_i32_0 : i32
    scf.if %2 {
      %cst_46 = arith.constant 0.000000e+00 : f32
      %55 = vector.broadcast %cst_46 : f32 to vector<4x2x4x256xf32>
      %c0_47 = arith.constant 0 : index
      %c0_48 = arith.constant 0 : index
      %c0_49 = arith.constant 0 : index
      %c0_50 = arith.constant 0 : index
      %c0_51 = arith.constant 0 : index
      %56 = vector.load %arg4[%c0_47, %c0_48, %c0_49, %c0_50, %c0_51] : memref<1x4x2x4x256xf32, #tpu.memory_space<vmem>>, vector<1x4x2x4x256xf32>
      %57 = vector.shape_cast %56 : vector<1x4x2x4x256xf32> to vector<4x2x4x256xf32>
      %58 = vector.shape_cast %55 : vector<4x2x4x256xf32> to vector<1x4x2x4x256xf32>
      tpu.vector_store %arg4[%c0_47, %c0_48, %c0_49, %c0_50, %c0_51], %58 {strides = array<i32>} : memref<1x4x2x4x256xf32, #tpu.memory_space<vmem>>, vector<1x4x2x4x256xf32>,
    } else {
    }
    %c0_i32_1 = arith.constant 0 : i32
    %c256_i32 = arith.constant 256 : i32
    %3 = arith.muli %c0_i32_1, %c256_i32 : i32
    %4 = tpu.assume_multiple %3, 256 : i32
    %c0 = arith.constant 0 : index
    %c0_2 = arith.constant 0 : index
    %5 = arith.index_cast %4 : i32 to index
    %6 = vector.load %arg2[%c0, %c0_2, %5] : memref<2x4x256xf32, #tpu.memory_space<vmem>>, vector<2x4x256xf32>
    %c0_3 = arith.constant 0 : index
    %c0_4 = arith.constant 0 : index
    %7 = arith.index_cast %4 : i32 to index
    %8 = vector.load %arg3[%c0_3, %c0_4, %7] : memref<2x4x256xf32, #tpu.memory_space<vmem>>, vector<2x4x256xf32>
    %9 = math.absf %6 : vector<2x4x256xf32>
    %cst = arith.constant 0.000000e+00 : f32
    %10 = vector.broadcast %cst : f32 to vector<2x4x256xf32>
    %11 = arith.subf %10, %9 : vector<2x4x256xf32>
    %12 = math.exp %11 : vector<2x4x256xf32>
    %cst_5 = arith.constant 1.000000e+00 : f32
    %13 = vector.broadcast %cst_5 : f32 to vector<2x4x256xf32>
    %14 = arith.addf %13, %12 : vector<2x4x256xf32>
    %cst_6 = arith.constant 0.000000e+00 : f32
    %15 = vector.broadcast %cst_6 : f32 to vector<2x4x256xf32>
    %16 = arith.maximumf %6, %15 : vector<2x4x256xf32>
    %17 = arith.mulf %6, %8 : vector<2x4x256xf32>
    %18 = arith.subf %16, %17 : vector<2x4x256xf32>
    %19 = math.log %14 : vector<2x4x256xf32>
    %20 = arith.addf %18, %19 : vector<2x4x256xf32>
    %21 = tpu.reciprocal %14 {approx = true} : vector<2x4x256xf32> -> vector<2x4x256xf32>
    %22 = arith.mulf %14, %21 : vector<2x4x256xf32>
    %cst_7 = arith.constant 2.000000e+00 : f32
    %23 = vector.broadcast %cst_7 : f32 to vector<2x4x256xf32>
    %24 = arith.subf %23, %22 : vector<2x4x256xf32>
    %25 = arith.mulf %21, %24 : vector<2x4x256xf32>
    %cst_8 = arith.constant 0.000000e+00 : f32
    %26 = vector.broadcast %cst_8 : f32 to vector<2x4x256xf32>
    %27 = arith.cmpf oge, %6, %26 : vector<2x4x256xf32>
    %28 = arith.mulf %12, %25 : vector<2x4x256xf32>
    %29 = arith.select %27, %25, %28 : vector<2x4x256xi1>, vector<2x4x256xf32>
    %c0_9 = arith.constant 0 : index
    %c0_10 = arith.constant 0 : index
    %c0_11 = arith.constant 0 : index
    %c0_12 = arith.constant 0 : index
    %c0_13 = arith.constant 0 : index
    %30 = vector.load %arg4[%c0_9, %c0_10, %c0_11, %c0_12, %c0_13] : memref<1x4x2x4x256xf32, #tpu.memory_space<vmem>>, vector<1x1x2x4x256xf32>
    %31 = vector.shape_cast %30 : vector<1x1x2x4x256xf32> to vector<2x4x256xf32>
    %32 = arith.mulf %29, %8 : vector<2x4x256xf32>
    %33 = arith.addf %31, %32 : vector<2x4x256xf32>
    %c0_14 = arith.constant 0 : index
    %c0_15 = arith.constant 0 : index
    %c0_16 = arith.constant 0 : index
    %c0_17 = arith.constant 0 : index
    %c0_18 = arith.constant 0 : index
    %34 = vector.load %arg4[%c0_14, %c0_15, %c0_16, %c0_17, %c0_18] : memref<1x4x2x4x256xf32, #tpu.memory_space<vmem>>, vector<1x1x2x4x256xf32>
    %35 = vector.shape_cast %34 : vector<1x1x2x4x256xf32> to vector<2x4x256xf32>
    %36 = vector.shape_cast %33 : vector<2x4x256xf32> to vector<1x1x2x4x256xf32>
    tpu.vector_store %arg4[%c0_14, %c0_15, %c0_16, %c0_17, %c0_18], %36 {strides = array<i32>} : memref<1x4x2x4x256xf32, #tpu.memory_space<vmem>>, vector<1x1x2x4x256xf32>,
    %c0_19 = arith.constant 0 : index
    %c1 = arith.constant 1 : index
    %c0_20 = arith.constant 0 : index
    %c0_21 = arith.constant 0 : index
    %c0_22 = arith.constant 0 : index
    %37 = vector.load %arg4[%c0_19, %c1, %c0_20, %c0_21, %c0_22] : memref<1x4x2x4x256xf32, #tpu.memory_space<vmem>>, vector<1x1x2x4x256xf32>
    %38 = vector.shape_cast %37 : vector<1x1x2x4x256xf32> to vector<2x4x256xf32>
    %39 = arith.addf %38, %29 : vector<2x4x256xf32>
    %c0_23 = arith.constant 0 : index
    %c1_24 = arith.constant 1 : index
    %c0_25 = arith.constant 0 : index
    %c0_26 = arith.constant 0 : index
    %c0_27 = arith.constant 0 : index
    %40 = vector.load %arg4[%c0_23, %c1_24, %c0_25, %c0_26, %c0_27] : memref<1x4x2x4x256xf32, #tpu.memory_space<vmem>>, vector<1x1x2x4x256xf32>
    %41 = vector.shape_cast %40 : vector<1x1x2x4x256xf32> to vector<2x4x256xf32>
    %42 = vector.shape_cast %39 : vector<2x4x256xf32> to vector<1x1x2x4x256xf32>
    tpu.vector_store %arg4[%c0_23, %c1_24, %c0_25, %c0_26, %c0_27], %42 {strides = array<i32>} : memref<1x4x2x4x256xf32, #tpu.memory_space<vmem>>, vector<1x1x2x4x256xf32>,
    %c0_28 = arith.constant 0 : index
    %c2 = arith.constant 2 : index
    %c0_29 = arith.constant 0 : index
    %c0_30 = arith.constant 0 : index
    %c0_31 = arith.constant 0 : index
    %43 = vector.load %arg4[%c0_28, %c2, %c0_29, %c0_30, %c0_31] : memref<1x4x2x4x256xf32, #tpu.memory_space<vmem>>, vector<1x1x2x4x256xf32>
    %44 = vector.shape_cast %43 : vector<1x1x2x4x256xf32> to vector<2x4x256xf32>
    %45 = arith.addf %44, %8 : vector<2x4x256xf32>
    %c0_32 = arith.constant 0 : index
    %c2_33 = arith.constant 2 : index
    %c0_34 = arith.constant 0 : index
    %c0_35 = arith.constant 0 : index
    %c0_36 = arith.constant 0 : index
    %46 = vector.load %arg4[%c0_32, %c2_33, %c0_34, %c0_35, %c0_36] : memref<1x4x2x4x256xf32, #tpu.memory_space<vmem>>, vector<1x1x2x4x256xf32>
    %47 = vector.shape_cast %46 : vector<1x1x2x4x256xf32> to vector<2x4x256xf32>
    %48 = vector.shape_cast %45 : vector<2x4x256xf32> to vector<1x1x2x4x256xf32>
    tpu.vector_store %arg4[%c0_32, %c2_33, %c0_34, %c0_35, %c0_36], %48 {strides = array<i32>} : memref<1x4x2x4x256xf32, #tpu.memory_space<vmem>>, vector<1x1x2x4x256xf32>,
    %c0_37 = arith.constant 0 : index
    %c3 = arith.constant 3 : index
    %c0_38 = arith.constant 0 : index
    %c0_39 = arith.constant 0 : index
    %c0_40 = arith.constant 0 : index
    %49 = vector.load %arg4[%c0_37, %c3, %c0_38, %c0_39, %c0_40] : memref<1x4x2x4x256xf32, #tpu.memory_space<vmem>>, vector<1x1x2x4x256xf32>
    %50 = vector.shape_cast %49 : vector<1x1x2x4x256xf32> to vector<2x4x256xf32>
    %51 = arith.addf %50, %20 : vector<2x4x256xf32>
    %c0_41 = arith.constant 0 : index
    %c3_42 = arith.constant 3 : index
    %c0_43 = arith.constant 0 : index
    %c0_44 = arith.constant 0 : index
    %c0_45 = arith.constant 0 : index
    %52 = vector.load %arg4[%c0_41, %c3_42, %c0_43, %c0_44, %c0_45] : memref<1x4x2x4x256xf32, #tpu.memory_space<vmem>>, vector<1x1x2x4x256xf32>
    %53 = vector.shape_cast %52 : vector<1x1x2x4x256xf32> to vector<2x4x256xf32>
    %54 = vector.shape_cast %51 : vector<2x4x256xf32> to vector<1x1x2x4x256xf32>
    tpu.vector_store %arg4[%c0_41, %c3_42, %c0_43, %c0_44, %c0_45], %54 {strides = array<i32>} : memref<1x4x2x4x256xf32, #tpu.memory_space<vmem>>, vector<1x1x2x4x256xf32>,
    %c1_i32 = arith.constant 1 : i32
    return
  }
  func.func @transform_0(%arg0: i32, %arg1: i32) -> (i32, i32, i32) {
    %c1_i32 = arith.constant 1 : i32
    %0 = arith.muli %arg0, %c1_i32 : i32
    %1 = arith.addi %0, %arg1 : i32
    %c0_i32 = arith.constant 0 : i32
    %2 = arith.minsi %1, %c0_i32 : i32
    %c0_i32_0 = arith.constant 0 : i32
    %c0_i32_1 = arith.constant 0 : i32
    %c0_i32_2 = arith.constant 0 : i32
    return %c0_i32_0, %c0_i32_1, %2 : i32, i32, i32
  }
  func.func @transform_1(%arg0: i32, %arg1: i32) -> (i32, i32, i32) {
    %c1_i32 = arith.constant 1 : i32
    %0 = arith.muli %arg0, %c1_i32 : i32
    %1 = arith.addi %0, %arg1 : i32
    %c0_i32 = arith.constant 0 : i32
    %2 = arith.minsi %1, %c0_i32 : i32
    %c0_i32_0 = arith.constant 0 : i32
    %c0_i32_1 = arith.constant 0 : i32
    %c0_i32_2 = arith.constant 0 : i32
    return %c0_i32_0, %c0_i32_1, %2 : i32, i32, i32
  }
  func.func @transform_2(%arg0: i32, %arg1: i32) -> (i32, i32, i32, i32, i32) {
    %c0_i32 = arith.constant 0 : i32
    %c0_i32_0 = arith.constant 0 : i32
    %c0_i32_1 = arith.constant 0 : i32
    %c0_i32_2 = arith.constant 0 : i32
    %c0_i32_3 = arith.constant 0 : i32
    return %arg0, %c0_i32, %c0_i32_0, %c0_i32_1, %c0_i32_2 : i32, i32, i32, i32, i32
  }
}

</mosaic_0001>

<bundles_post_ra>
// kernel: tpu_custom_call.1
= control target key start
LH: loop header
LB: loop body
LE: loop exit
PB: predicated region body
PF: predicated region fallthrough
CT: control target
= control target key end

     0   :  { %7 = vsyncpa [#allocation3], 0  ;;  %s318_s0 = inlined_call_operand.hbm [shape: f32[2,4,256], index: 0, kind: input, shape index: {}]   ;;  %s319_s1 = inlined_call_operand.hbm [shape: f32[2,4,256], index: 1, kind: input, shape index: {}]   ;;  %s320_s2 = inlined_call_operand.hbm [shape: f32[1,4,2,4,256], index: 2, kind: output, shape index: {}]  }
   0x1   :  { %8 = vsyncpa [#allocation6], 0 }
   0x2   :  { %9 = vsyncpa [#allocation4], 0  ;;  %s253_s9 = smov [#allocation2]   ;;  %s181_s13 = scalar_lea.hbm %s318_s0, 256 }
   0x3   :  { %s21_s10 = sshll.u32 %s253_s9, 4  ;;  %p182_p0 = scmp.ne.s32.totalorder %s318_s0, %s181_s13  ;;  %s22_s10 = int_to_ptr.vmem [resolvable:$true] %s21_s10 }
   0x4   :  { %p185_p1 = scmp.lt.u32.totalorder %s181_s13, %s318_s0 }
   0x6   :  { %p187_p2 = pnand %p185_p1, %p182_p0 }
   0x8   :  { %190 = shalt.err (!%p187_p2)
}
   0x9   :  { %s191_s18 = scalar_lea.vmem %s22_s10, 256  ;;  %p196_p4 = scmp.lt.s32.totalorder %s22_s10, %s22_s10 }
   0xa   :  { %p192_p3 = scmp.ne.s32.totalorder %s22_s10, %s191_s18  ;;  %p197_p5 = scmp.lt.s32.totalorder %s191_s18, %s191_s18 }
   0xc   :  { %p198_p6 = por %p197_p5, %p196_p4 }
   0xe   :  { %p199_p7 = pnand %p198_p6, %p192_p3 }
  0x10   :  { %202 = shalt.err (!%p199_p7)
}
  0x11   :  { %s254_s19 = smov 128   ;;  %s255_s20 = smov 8  }
  0x12   :  { %27 = dma.hbm_to_vmem [thread:$0]  %s318_s0, 256, %s22_s10, [#allocation3], %s254_s19, %s254_s19, %s255_s20  }
  0x13   :  { %s256_s23 = smov [#allocation5]   ;;  %s203_s27 = scalar_lea.hbm %s319_s1, 256 }
  0x14   :  { %s39_s24 = sshll.u32 %s256_s23, 4  ;;  %p204_p8 = scmp.ne.s32.totalorder %s319_s1, %s203_s27  ;;  %s40_s24 = int_to_ptr.vmem [resolvable:$true] %s39_s24 }
  0x15   :  { %p207_p9 = scmp.lt.u32.totalorder %s203_s27, %s319_s1 }
  0x17   :  { %p209_p10 = pnand %p207_p9, %p204_p8 }
  0x19   :  { %212 = shalt.err (!%p209_p10)
}
  0x1a   :  { %s213_s4 = scalar_lea.vmem %s40_s24, 256  ;;  %p218_p12 = scmp.lt.s32.totalorder %s40_s24, %s40_s24 }
  0x1b   :  { %p214_p11 = scmp.ne.s32.totalorder %s40_s24, %s213_s4  ;;  %p219_p13 = scmp.lt.s32.totalorder %s213_s4, %s213_s4 }
  0x1d   :  { %p220_p0 = por %p219_p13, %p218_p12 }
  0x1f   :  { %p221_p1 = pnand %p220_p0, %p214_p11 }
  0x21   :  { %224 = shalt.err (!%p221_p1)
}
  0x22   :  { %45 = dma.hbm_to_vmem [thread:$0]  %s319_s1, 256, %s40_s24, [#allocation6], %s254_s19, %s254_s19, %s255_s20  }
  0x23   :  { %247 = dma.done.wait [#allocation3], 256  }
  0x24   :  { %248 = vsyncadd [#allocation3], 4294967040 }
  0x25   :  { %249 = dma.done.wait [#allocation6], 256  }
  0x26   :  { %250 = vsyncadd [#allocation6], 4294967040  ;;  %v72_v0 = vld [vmem:[#allocation2] sm:$0xff]  ;;  %v74_v1 = vld [vmem:[#allocation5] sm:$0xff]  ;;  %s257_s1 = smov [#allocation7]  }
  0x27   :  { %v73_v2 = vld [vmem:[#allocation2 + $0x8] sm:$0xff]  ;;  %v76_v3 = vand.u32 2147483647, %v72_v0  ;;  %v75_v4 = vld [vmem:[#allocation5 + $0x8] sm:$0xff]  ;;  %132 = vst [vmem:[#allocation7 + $0x20] sm:$0xff] %v74_v1  ;;  %v86_v14 = vmax.f32 %v72_v0, 0.0  ;;  %v88_v15 = vmul.f32 %v74_v1, %v72_v0 }
  0x28   :  { %v77_v5 = vand.u32 2147483647, %v73_v2  ;;  %133 = vst [vmem:[#allocation7 + $0x28] sm:$0xff] %v75_v4  ;;  %v87_v16 = vmax.f32 %v73_v2, 0.0  ;;  %v89_v17 = vmul.f32 %v75_v4, %v73_v2  ;;  %vm106_vm0 = vcmp.ge.f32.partialorder %v72_v0, 0.0  ;;  %s146_s6 = sshll.u32 %s257_s1, 4  ;;  %s147_s6 = int_to_ptr.vmem [resolvable:$true] %s146_s6 }
  0x29   :  { %v78_v6 = vsub.f32 0.0, %v76_v3  ;;  %v90_v21 = vsub.f32 %v86_v14, %v88_v15  ;;  %vm107_vm1 = vcmp.ge.f32.partialorder %v73_v2, 0.0  ;;  %s225_s7 = scalar_lea.vmem %s147_s6, 1024  ;;  %p230_p3 = scmp.lt.s32.totalorder %s147_s6, %s147_s6 }
  0x2a   :  { %v79_v7 = vsub.f32 0.0, %v77_v5  ;;  %v91_v24 = vsub.f32 %v87_v16, %v89_v17  ;;  %p226_p2 = scmp.ne.s32.totalorder %s147_s6, %s225_s7  ;;  %p231_p4 = scmp.lt.s32.totalorder %s225_s7, %s225_s7 }
  0x2b   :  { %v80_v8 = vmul.f32 1.442695, %v78_v6 }
  0x2c   :  { %v82_v9 = vmul.f32 1.442695, %v79_v7  ;;  %p232_p5 = por %p231_p4, %p230_p3 }
  0x2d   :  { %169 = vpow2.f32 %v80_v8 }
  0x2e   :  { %171 = vpow2.f32 %v82_v9  ;;  %p233_p6 = pnand %p232_p5, %p226_p2 }
  0x37   :  { %v170_v10 = vpop.eup %169 }
  0x38   :  { %v172_v11 = vpop.eup %171  ;;  %v84_v12 = vadd.f32 1.0, %v170_v10 }
  0x39   :  { %v85_v13 = vadd.f32 1.0, %v172_v11 }
  0x3a   :  { %173 = vrcp.f32 %v84_v12 }
  0x3b   :  { %175 = vrcp.f32 %v85_v13 }
  0x3c   :  { %177 = vlog2.f32 %v84_v12 }
  0x3d   :  { %179 = vlog2.f32 %v85_v13 }
  0x44   :  { %v174_v18 = vpop.eup %173 }
  0x45   :  { %v176_v19 = vpop.eup %175  ;;  %v100_v20 = vmul.f32 %v174_v18, %v84_v12 }
  0x46   :  { %v178_v22 = vpop.eup %177  ;;  %v101_v23 = vmul.f32 %v176_v19, %v85_v13 }
  0x47   :  { %v180_v25 = vpop.eup %179  ;;  %v102_v26 = vsub.f32 2.0, %v100_v20  ;;  %v93_v27 = vmul.f32 0.6931472, %v178_v22 }
  0x48   :  { %v103_v28 = vsub.f32 2.0, %v101_v23  ;;  %v95_v29 = vmul.f32 0.6931472, %v180_v25 }
  0x49   :  { %v104_v30 = vmul.f32 %v174_v18, %v102_v26  ;;  %v96_v31 = vadd.f32 %v93_v27, %v90_v21 }
  0x4a   :  { %v105_v32 = vmul.f32 %v176_v19, %v103_v28  ;;  %v97_v33 = vadd.f32 %v95_v29, %v91_v24 }
  0x4b   :  { %v108_v34 = vmul.f32 %v170_v10, %v104_v30  ;;  %139 = vst [vmem:[#allocation7 + $0x30] sm:$0xff] %v96_v31 }
  0x4c   :  { %v109_v35 = vmul.f32 %v172_v11, %v105_v32  ;;  %140 = vst [vmem:[#allocation7 + $0x38] sm:$0xff] %v97_v33 }
  0x4d   :  { %v110_v36 = vsel %vm106_vm0, %v104_v30, %v108_v34 }
  0x4e   :  { %v114_v37 = vmul.f32 %v110_v36, %v74_v1  ;;  %v111_v38 = vsel %vm107_vm1, %v105_v32, %v109_v35  ;;  %125 = vst [vmem:[#allocation7 + $0x10] sm:$0xff] %v110_v36 }
  0x4f   :  { %v115_v39 = vmul.f32 %v111_v38, %v75_v4  ;;  %126 = vst [vmem:[#allocation7 + $0x18] sm:$0xff] %v111_v38 }
  0x50   :  { %118 = vst [vmem:[#allocation7] sm:$0xff] %v114_v37 }
  0x51   :  { %119 = vst [vmem:[#allocation7 + $0x8] sm:$0xff] %v115_v39 }
  0x52   :  { %236 = shalt.err (!%p233_p6)
}
  0x53   :  { %s237_s10 = scalar_lea.hbm %s320_s2, 1024 }
  0x54   :  { %p238_p7 = scmp.ne.s32.totalorder %s320_s2, %s237_s10  ;;  %p241_p8 = scmp.lt.u32.totalorder %s237_s10, %s320_s2 }
  0x56   :  { %p243_p9 = pnand %p241_p8, %p238_p7 }
  0x58   :  { %246 = shalt.err (!%p243_p9)
}
  0x59   :  { %152 = dma.vmem_to_hbm [thread:$0]  %s147_s6, 1024, %s320_s2, [#allocation4], %s254_s19, %s254_s19, %s255_s20  }
  0x5a   :  { %251 = dma.done.wait [#allocation4], 1024  }
  0x5b   :  { %252 = vsyncadd [#allocation4], 4294966272 }
  0x5c   :  { %156 = vsyncpa [#allocation3], 1 }
  0x5d   :  { %157 = vsyncpa [#allocation6], 1 }
  0x5e   :  { %158 = vsyncpa [#allocation4], 1 }

</bundles_post_ra>
